<compile_context>
chip_gen: v7x
topology: tpu7x:2x2x1
jax: 0.10.0
libtpu: 0.0.40
codegen_flags: <defaults>
</compile_context>

<pallas_src>
import functools
import math

import jax
import jax.numpy as jnp
from jax.experimental import pallas as pl
from jax.experimental.pallas import tpu as pltpu

EPS = 1e-5

_FUSE_THRESHOLD_BYTES = 4 << 20   # fuse whole image into one kernel if slab <= 4 MiB
_TILE_BUDGET_BYTES = 4 << 20      # per-block budget in the tiled fallback
_VMEM_LIMIT_BYTES = 32 << 20      # modest; never request all of v7x's 64 MiB


def _hsigmoid(y):
    return jnp.clip(y + 3.0, 0.0, 6.0) * (1.0 / 6.0)


def _excite(mean, w1, s1, b1, w2, s2, b2):
    # mean: (1, C) f32 -> gate (1, C) f32.  Tiny M=1 matmuls; off the critical path.
    y = jnp.dot(mean, w1, preferred_element_type=jnp.float32)
    y = jnp.maximum(y * s1 + b1, 0.0)
    y = jnp.dot(y, w2, preferred_element_type=jnp.float32)
    y = y * s2 + b2
    return _hsigmoid(y)


# ----------------------------------------------------------------------------
# Fused kernel: GAP + excite + scale on a whole (1, C, H*W) image block.
# grid = (N,)
# ----------------------------------------------------------------------------
def _se_fused_kernel(x_ref, w1_ref, s1_ref, b1_ref, w2_ref, s2_ref, b2_ref,
                     o_ref, *, inv_hw):
    x = x_ref[...].astype(jnp.float32)                       # (1, C, HW)
    mean = jnp.sum(x, axis=2) * inv_hw                       # (1, C)
    gate = _excite(mean, w1_ref[...], s1_ref[...], b1_ref[...],
                   w2_ref[...], s2_ref[...], b2_ref[...])    # (1, C)
    o_ref[...] = (x * gate[:, :, None]).astype(o_ref.dtype)


# ----------------------------------------------------------------------------
# Fallback kernel 1: squeeze (partial spatial sums) + excite on the last tile.
# grid = (N, S_tiles); S_tiles is a reduction axis accumulating into VMEM scratch.
# ----------------------------------------------------------------------------
def _se_squeeze_excite_kernel(x_ref, w1_ref, s1_ref, b1_ref, w2_ref, s2_ref,
                              b2_ref, gate_ref, acc_ref, *, inv_hw):
    s = pl.program_id(1)

    @pl.when(s == 0)
    def _():
        acc_ref[...] = jnp.zeros_like(acc_ref)

    acc_ref[...] += jnp.sum(x_ref[...].astype(jnp.float32), axis=2)   # (1, C)

    @pl.when(s == pl.num_programs(1) - 1)
    def _():
        mean = acc_ref[...] * inv_hw
        gate_ref[...] = _excite(mean, w1_ref[...], s1_ref[...], b1_ref[...],
                                w2_ref[...], s2_ref[...], b2_ref[...])


# ----------------------------------------------------------------------------
# Fallback kernel 2: broadcast multiply  out = x * gate  (gate broadcast over HW)
# ----------------------------------------------------------------------------
def _se_scale_kernel(x_ref, g_ref, o_ref):
    x = x_ref[...].astype(jnp.float32)                        # (1, C, T)
    o_ref[...] = (x * g_ref[...][:, :, None]).astype(o_ref.dtype)


# ----------------------------------------------------------------------------
# Spatial (lane-axis) tile picker for the fallback path: largest divisor of HW
# that is a multiple of 128 (lane-dense, unmasked stores) and fits the budget.
# ----------------------------------------------------------------------------
def _pick_spatial_tile(hw, row_bytes, budget_bytes):
    divisors = sorted({d for i in range(1, int(math.isqrt(hw)) + 1) if hw % i == 0
                       for d in (i, hw // i)}, reverse=True)
    aligned = [t for t in divisors
               if (t % 128 == 0 or t == hw) and t * row_bytes <= budget_bytes]
    if aligned:
        return aligned[0]
    fitting = [t for t in divisors if t * row_bytes <= budget_bytes]
    if fitting:
        return fitting[0]
    # TODO(synk): no divisor of H*W fits the budget; fall back to whole image.
    return hw


# ----------------------------------------------------------------------------
# Public forward (NCHW in / NCHW out, like the PyTorch module)
# ----------------------------------------------------------------------------
def se_module_forward(x_nchw, p, *,
                      fuse_threshold_bytes=_FUSE_THRESHOLD_BYTES,
                      tile_budget_bytes=_TILE_BUDGET_BYTES):
    N, C, H, W = x_nchw.shape
    HW = H * W
    Cr = p["w1"].shape[1]
    dtype = x_nchw.dtype
    itemsize = jnp.dtype(dtype).itemsize

    x = x_nchw.reshape(N, C, HW)            # free view of NCHW; lanes = H*W

    s1 = p["scale1"].reshape(1, Cr)
    b1 = p["bias1"].reshape(1, Cr)
    s2 = p["scale2"].reshape(1, C)
    b2 = p["bias2"].reshape(1, C)
    inv_hw = 1.0 / float(HW)

    per_image_bytes = C * HW * itemsize

    if per_image_bytes <= fuse_threshold_bytes:
        # ---- fused single pass: GAP -> excite -> scale -------------------------
        out = pl.pallas_call(
            functools.partial(_se_fused_kernel, inv_hw=inv_hw),
            out_shape=jax.ShapeDtypeStruct((N, C, HW), dtype),
            grid=(N,),
            in_specs=[
                pl.BlockSpec((1, C, HW), lambda n: (n, 0, 0)),
                pl.BlockSpec((C, Cr), lambda n: (0, 0)),
                pl.BlockSpec((1, Cr), lambda n: (0, 0)),
                pl.BlockSpec((1, Cr), lambda n: (0, 0)),
                pl.BlockSpec((Cr, C), lambda n: (0, 0)),
                pl.BlockSpec((1, C), lambda n: (0, 0)),
                pl.BlockSpec((1, C), lambda n: (0, 0)),
            ],
            out_specs=pl.BlockSpec((1, C, HW), lambda n: (n, 0, 0)),
            compiler_params=pltpu.CompilerParams(
                dimension_semantics=("parallel",),
                vmem_limit_bytes=_VMEM_LIMIT_BYTES),
        )(x, p["w1"], s1, b1, p["w2"], s2, b2)
        return out.reshape(N, C, H, W)

    # ---- fallback: two-pass, spatial-tiled (large images only) -----------------
    T = _pick_spatial_tile(HW, C * itemsize, tile_budget_bytes)
    ST = HW // T

    gate = pl.pallas_call(
        functools.partial(_se_squeeze_excite_kernel, inv_hw=inv_hw),
        out_shape=jax.ShapeDtypeStruct((N, C), jnp.float32),
        grid=(N, ST),
        in_specs=[
            pl.BlockSpec((1, C, T), lambda n, s: (n, 0, s)),
            pl.BlockSpec((C, Cr), lambda n, s: (0, 0)),
            pl.BlockSpec((1, Cr), lambda n, s: (0, 0)),
            pl.BlockSpec((1, Cr), lambda n, s: (0, 0)),
            pl.BlockSpec((Cr, C), lambda n, s: (0, 0)),
            pl.BlockSpec((1, C), lambda n, s: (0, 0)),
            pl.BlockSpec((1, C), lambda n, s: (0, 0)),
        ],
        out_specs=pl.BlockSpec((1, C), lambda n, s: (n, 0)),
        scratch_shapes=[pltpu.VMEM((1, C), jnp.float32)],
        compiler_params=pltpu.CompilerParams(
            dimension_semantics=("parallel", "arbitrary"),
            vmem_limit_bytes=_VMEM_LIMIT_BYTES),
    )(x, p["w1"], s1, b1, p["w2"], s2, b2)

    out = pl.pallas_call(
        _se_scale_kernel,
        out_shape=jax.ShapeDtypeStruct((N, C, HW), dtype),
        grid=(N, ST),
        in_specs=[
            pl.BlockSpec((1, C, T), lambda n, s: (n, 0, s)),
            pl.BlockSpec((1, C), lambda n, s: (n, 0)),
        ],
        out_specs=pl.BlockSpec((1, C, T), lambda n, s: (n, 0, s)),
        compiler_params=pltpu.CompilerParams(
            dimension_semantics=("parallel", "parallel"),
            vmem_limit_bytes=_VMEM_LIMIT_BYTES),
    )(x, gate)
    return out.reshape(N, C, H, W)


# ----------------------------------------------------------------------------
# Parameters (deterministic; eval-mode BN folded to scale/bias)
# ----------------------------------------------------------------------------
def init_se_params(key, c, reduction=4):
    assert c % reduction == 0
    cr = c // reduction
    k1, k2 = jax.random.split(key)

    def bn(n):  # gamma=1, beta=0, running mean=0, var=1
        return (jnp.full((n,), 1.0 / math.sqrt(1.0 + EPS), jnp.float32),
                jnp.zeros((n,), jnp.float32))

    s1, b1 = bn(cr)
    s2, b2 = bn(c)
    std1 = math.sqrt(2.0 / cr)   # kaiming-normal fan_out for 1x1 conv
    std2 = math.sqrt(2.0 / c)
    return dict(
        w1=std1 * jax.random.normal(k1, (c, cr), jnp.float32),
        scale1=s1, bias1=b1,
        w2=std2 * jax.random.normal(k2, (cr, c), jnp.float32),
        scale2=s2, bias2=b2,
    )


# ----------------------------------------------------------------------------
# Pure-JAX reference (NCHW) for a correctness smoke test
# ----------------------------------------------------------------------------
def se_reference(x, p):
    s = jnp.mean(x.astype(jnp.float32), axis=(2, 3))                   # (N, C)
    y = jnp.dot(s, p["w1"]) * p["scale1"] + p["bias1"]
    y = jnp.maximum(y, 0.0)
    y = jnp.dot(y, p["w2"]) * p["scale2"] + p["bias2"]
    y = jnp.clip(y + 3.0, 0.0, 6.0) / 6.0                              # hsigmoid
    return (x.astype(jnp.float32) * y[:, :, None, None]).astype(x.dtype)


# ----------------------------------------------------------------------------
# Main
# ----------------------------------------------------------------------------
if __name__ == "__main__":
    key = jax.random.PRNGKey(0)
    pkey, xkey = jax.random.split(key)

    N, C, H, W = 2, 32, 16, 16          # small NCHW input, in_size=32, reduction=4
    params = init_se_params(pkey, C, reduction=4)
    x = jax.random.normal(xkey, (N, C, H, W), jnp.float32)

    ref = se_reference(x, params)

    # Fused single-pass path (default for MobileNetV3-sized SE stages).
    fwd = jax.jit(se_module_forward)
    out = jax.block_until_ready(fwd(x, params))
    assert out.shape == (N, C, H, W), out.shape
    assert out.dtype == x.dtype, out.dtype
    assert bool(jnp.all(jnp.isfinite(out)))
    assert bool(jnp.allclose(out, ref, rtol=1e-2, atol=1e-2)), \
        float(jnp.max(jnp.abs(out - ref)))

    # Two-pass spatial-tiled fallback (forced, exercises the reduction grid).
    fwd2 = jax.jit(functools.partial(se_module_forward,
                                     fuse_threshold_bytes=0,
                                     tile_budget_bytes=C * 128 * 4))
    out2 = jax.block_until_ready(fwd2(x, params))
    assert bool(jnp.allclose(out2, ref, rtol=1e-2, atol=1e-2)), \
        float(jnp.max(jnp.abs(out2 - ref)))

    print("KERNEL_OK")
</pallas_src>

<mosaic_0001>
module attributes {stable_mosaic.version = 11 : i64} {
  func.func @_se_fused_kernel(%arg0: i32, %arg1: memref<1x32x256xf32, #tpu.memory_space<vmem>>, %arg2: memref<32x8xf32, #tpu.memory_space<vmem>>, %arg3: memref<1x8xf32, #tpu.memory_space<vmem>>, %arg4: memref<1x8xf32, #tpu.memory_space<vmem>>, %arg5: memref<8x32xf32, #tpu.memory_space<vmem>>, %arg6: memref<1x32xf32, #tpu.memory_space<vmem>>, %arg7: memref<1x32xf32, #tpu.memory_space<vmem>>, %arg8: memref<1x32x256xf32, #tpu.memory_space<vmem>>) attributes {dimension_semantics = [#tpu.dimension_semantics<parallel>], iteration_bounds = array<i64: 2>, scalar_prefetch = 0 : i64, scratch_operands = 0 : i64, tpu.core_type = #tpu.core_type<tc>, window_params = [{transform_indices = @transform_0, window_bounds = array<i64: 1, 32, 256>}, {pipeline_mode = #tpu.pipeline_mode<synchronous>, transform_indices = @transform_1, window_bounds = array<i64: 32, 8>}, {pipeline_mode = #tpu.pipeline_mode<synchronous>, transform_indices = @transform_2, window_bounds = array<i64: 1, 8>}, {pipeline_mode = #tpu.pipeline_mode<synchronous>, transform_indices = @transform_3, window_bounds = array<i64: 1, 8>}, {pipeline_mode = #tpu.pipeline_mode<synchronous>, transform_indices = @transform_4, window_bounds = array<i64: 8, 32>}, {pipeline_mode = #tpu.pipeline_mode<synchronous>, transform_indices = @transform_5, window_bounds = array<i64: 1, 32>}, {pipeline_mode = #tpu.pipeline_mode<synchronous>, transform_indices = @transform_6, window_bounds = array<i64: 1, 32>}, {transform_indices = @transform_7, window_bounds = array<i64: 1, 32, 256>}]} {
    %c0 = arith.constant 0 : index
    %c0_0 = arith.constant 0 : index
    %c0_1 = arith.constant 0 : index
    %0 = vector.load %arg1[%c0, %c0_0, %c0_1] : memref<1x32x256xf32, #tpu.memory_space<vmem>>, vector<1x32x256xf32>
    %cst = arith.constant dense<0.000000e+00> : vector<1x32xf32>
    %1 = vector.multi_reduction <add>, %0, %cst [2] : vector<1x32x256xf32> to vector<1x32xf32>
    %cst_2 = arith.constant 3.906250e-03 : f32
    %2 = vector.broadcast %cst_2 : f32 to vector<1x32xf32>
    %3 = arith.mulf %1, %2 : vector<1x32xf32>
    %c0_3 = arith.constant 0 : index
    %c0_4 = arith.constant 0 : index
    %4 = vector.load %arg2[%c0_3, %c0_4] : memref<32x8xf32, #tpu.memory_space<vmem>>, vector<32x8xf32>
    %c0_5 = arith.constant 0 : index
    %c0_6 = arith.constant 0 : index
    %5 = vector.load %arg3[%c0_5, %c0_6] : memref<1x8xf32, #tpu.memory_space<vmem>>, vector<1x8xf32>
    %c0_7 = arith.constant 0 : index
    %c0_8 = arith.constant 0 : index
    %6 = vector.load %arg4[%c0_7, %c0_8] : memref<1x8xf32, #tpu.memory_space<vmem>>, vector<1x8xf32>
    %c0_9 = arith.constant 0 : index
    %c0_10 = arith.constant 0 : index
    %7 = vector.load %arg5[%c0_9, %c0_10] : memref<8x32xf32, #tpu.memory_space<vmem>>, vector<8x32xf32>
    %c0_11 = arith.constant 0 : index
    %c0_12 = arith.constant 0 : index
    %8 = vector.load %arg6[%c0_11, %c0_12] : memref<1x32xf32, #tpu.memory_space<vmem>>, vector<1x32xf32>
    %c0_13 = arith.constant 0 : index
    %c0_14 = arith.constant 0 : index
    %9 = vector.load %arg7[%c0_13, %c0_14] : memref<1x32xf32, #tpu.memory_space<vmem>>, vector<1x32xf32>
    %cst_15 = arith.constant dense<0.000000e+00> : vector<1x8xf32>
    %10 = tpu.matmul %3, %4, %cst_15 {dimension_numbers = #tpu.dot_dimension_numbers<[1], [0], [0], [1], [0, 0, 1, 1], [], []>} : vector<1x32xf32>, vector<32x8xf32>, vector<1x8xf32> -> vector<1x8xf32>
    %11 = arith.mulf %10, %5 : vector<1x8xf32>
    %12 = arith.addf %11, %6 : vector<1x8xf32>
    %cst_16 = arith.constant 0.000000e+00 : f32
    %13 = vector.broadcast %cst_16 : f32 to vector<1x8xf32>
    %14 = arith.maximumf %12, %13 : vector<1x8xf32>
    %cst_17 = arith.constant dense<0.000000e+00> : vector<1x32xf32>
    %15 = tpu.matmul %14, %7, %cst_17 {dimension_numbers = #tpu.dot_dimension_numbers<[1], [0], [0], [1], [0, 0, 1, 1], [], []>} : vector<1x8xf32>, vector<8x32xf32>, vector<1x32xf32> -> vector<1x32xf32>
    %16 = arith.mulf %15, %8 : vector<1x32xf32>
    %17 = arith.addf %16, %9 : vector<1x32xf32>
    %cst_18 = arith.constant 3.000000e+00 : f32
    %18 = vector.broadcast %cst_18 : f32 to vector<1x32xf32>
    %19 = arith.addf %17, %18 : vector<1x32xf32>
    %cst_19 = arith.constant 0.000000e+00 : f32
    %cst_20 = arith.constant 6.000000e+00 : f32
    %20 = vector.broadcast %cst_19 : f32 to vector<1x32xf32>
    %21 = arith.maximumf %20, %19 : vector<1x32xf32>
    %22 = vector.broadcast %cst_20 : f32 to vector<1x32xf32>
    %23 = arith.minimumf %22, %21 : vector<1x32xf32>
    %cst_21 = arith.constant 0.166666672 : f32
    %24 = vector.broadcast %cst_21 : f32 to vector<1x32xf32>
    %25 = arith.mulf %23, %24 : vector<1x32xf32>
    %26 = vector.shape_cast %25 : vector<1x32xf32> to vector<1x32x1xf32>
    %27 = vector.broadcast %26 : vector<1x32x1xf32> to vector<1x32x256xf32>
    %28 = arith.mulf %0, %27 : vector<1x32x256xf32>
    %c0_22 = arith.constant 0 : index
    %c0_23 = arith.constant 0 : index
    %c0_24 = arith.constant 0 : index
    %29 = vector.load %arg8[%c0_22, %c0_23, %c0_24] : memref<1x32x256xf32, #tpu.memory_space<vmem>>, vector<1x32x256xf32>
    tpu.vector_store %arg8[%c0_22, %c0_23, %c0_24], %28 {strides = array<i32>} : memref<1x32x256xf32, #tpu.memory_space<vmem>>, vector<1x32x256xf32>,
    return
  }
  func.func @transform_0(%arg0: i32) -> (i32, i32, i32) {
    %c0_i32 = arith.constant 0 : i32
    %c0_i32_0 = arith.constant 0 : i32
    %c0_i32_1 = arith.constant 0 : i32
    return %arg0, %c0_i32, %c0_i32_0 : i32, i32, i32
  }
  func.func @transform_1(%arg0: i32) -> (i32, i32) {
    %c0_i32 = arith.constant 0 : i32
    %c0_i32_0 = arith.constant 0 : i32
    %c0_i32_1 = arith.constant 0 : i32
    return %c0_i32, %c0_i32_0 : i32, i32
  }
  func.func @transform_2(%arg0: i32) -> (i32, i32) {
    %c0_i32 = arith.constant 0 : i32
    %c0_i32_0 = arith.constant 0 : i32
    %c0_i32_1 = arith.constant 0 : i32
    return %c0_i32, %c0_i32_0 : i32, i32
  }
  func.func @transform_3(%arg0: i32) -> (i32, i32) {
    %c0_i32 = arith.constant 0 : i32
    %c0_i32_0 = arith.constant 0 : i32
    %c0_i32_1 = arith.constant 0 : i32
    return %c0_i32, %c0_i32_0 : i32, i32
  }
  func.func @transform_4(%arg0: i32) -> (i32, i32) {
    %c0_i32 = arith.constant 0 : i32
    %c0_i32_0 = arith.constant 0 : i32
    %c0_i32_1 = arith.constant 0 : i32
    return %c0_i32, %c0_i32_0 : i32, i32
  }
  func.func @transform_5(%arg0: i32) -> (i32, i32) {
    %c0_i32 = arith.constant 0 : i32
    %c0_i32_0 = arith.constant 0 : i32
    %c0_i32_1 = arith.constant 0 : i32
    return %c0_i32, %c0_i32_0 : i32, i32
  }
  func.func @transform_6(%arg0: i32) -> (i32, i32) {
    %c0_i32 = arith.constant 0 : i32
    %c0_i32_0 = arith.constant 0 : i32
    %c0_i32_1 = arith.constant 0 : i32
    return %c0_i32, %c0_i32_0 : i32, i32
  }
  func.func @transform_7(%arg0: i32) -> (i32, i32, i32) {
    %c0_i32 = arith.constant 0 : i32
    %c0_i32_0 = arith.constant 0 : i32
    %c0_i32_1 = arith.constant 0 : i32
    return %arg0, %c0_i32, %c0_i32_0 : i32, i32, i32
  }
}

</mosaic_0001>

<bundles_post_ra>
// kernel: se_module_forward.1
= control target key start
LH: loop header
LB: loop body
LE: loop exit
PB: predicated region body
PF: predicated region fallthrough
CT: control target
= control target key end

     0   :  { %s695_s24 = smov 0   ;;  %s778_s0 = inlined_call_operand.vmem [shape: f32[2,32,256], index: 0, kind: input, shape index: {}]   ;;  %s779_s1 = inlined_call_operand.vmem [shape: f32[32,8], index: 1, kind: input, shape index: {}]   ;;  %s780_s2 = inlined_call_operand.vmem [shape: f32[1,8], index: 2, kind: input, shape index: {}]   ;;  %s781_s3 = inlined_call_operand.vmem [shape: f32[1,8], index: 3, kind: input, shape index: {}]   ;;  %s782_s4 = inlined_call_operand.vmem [shape: f32[8,32], index: 4, kind: input, shape index: {}]   ;;  %s783_s5 = inlined_call_operand.vmem [shape: f32[1,32], index: 5, kind: input, shape index: {}]   ;;  %s784_s6 = inlined_call_operand.vmem [shape: f32[1,32], index: 6, kind: input, shape index: {}]   ;;  %s785_s7 = inlined_call_operand.vmem [shape: f32[2,32,256], index: 7, kind: output, shape index: {}]  }
   0x1 LB: > { %s589_s25 = sadd.s32 4294967295, %s650_s24   ;;  %p593_p0 = scmp.ge.s32.totalorder %s650_s24, 1  ;;  %s650_s24 = sphi %s695_s24, %s17_s24  }
   0x2   : > { %p237_p1 = scmp.lt.s32.totalorder %s650_s24, 3 }
   0x4   : > { %p238_p2 = pnand %p593_p0, %p237_p1 }
   0x5   : > { %p269_p3 = scmp.lt.s32.totalorder (!%p238_p2), %s589_s25, 1  ;;  %v303_v12 = vld [vmem:[%s779_s1] sm:$0xff] (!%p238_p2)  ;;  %v304_v13 = vld [vmem:[%s779_s1 + $0x8] sm:$0xff] (!%p238_p2)  ;;  %v652_v15 = vmov (!%p238_p2), 0.0|0.0   ;;  %v305_v16 = vld [vmem:[%s779_s1 + $0x10] sm:$0xff] (!%p238_p2)  ;;  %vm653_vm0 = vmmov (!%p238_p2), 0   ;;  %v316_v20 = vlaneseq (!%p238_p2) }
   0x6   : > { %241 = sbr.rel (%p238_p2) target bundleno = 742 (0x2e6), region = 48  ;;  %v628_v14 = vpack.c.bf16 (!%p238_p2), %v304_v13, %v303_v12  ;;  %627 = vmatprep.subr.bf16.mxu0 (!%p238_p2), %v652_v15  ;;  %v306_v17 = vld [vmem:[%s779_s1 + $0x18] sm:$0xff] (!%p238_p2)  ;;  %v654_v19 = vmov (!%p238_p2), 0.0   ;;  %vm327_vm1 = vcmask (!%p238_p2), 130112   ;;  %vm334_vm2 = vcmask (!%p238_p2), 195712   ;;  %v309_v45 = vld [vmem:[%s782_s4] sm:$0xff] (!%p238_p2) }
   0x7   : > { %v631_v18 = vpack.c.bf16 (!%p238_p2), %v306_v17, %v305_v16  ;;  %619 = vmatprep.mubr.msk.f32.mxu0 (!%p238_p2), %vm653_vm0, %v654_v19  ;;  %622 = vmatprep.subr.mxu1 (!%p238_p2), %v654_v19  ;;  %v317_v21 = vand.u32 (!%p238_p2), 127, %v316_v20  ;;  %v319_v22 = vshrl.u32 (!%p238_p2), %v316_v20, 7  ;;  %vm341_vm3 = vcmask (!%p238_p2), 261312   ;;  %v307_v46 = vld [vmem:[%s780_s2] sm:$0x1] (!%p238_p2) }
   0x8   : > { %629 = vmatpush3.bf16.msra.mxu0 (!%p238_p2), %v628_v14  ;;  %624 = vmatprep.mubr.msk.f32.mxu1 (!%p238_p2), %vm653_vm0, %v654_v19  ;;  %vm343_vm4 = vcmask (!%p238_p2), 261120   ;;  %v308_v47 = vld [vmem:[%s781_s3] sm:$0x1] (!%p238_p2)  ;;  %vm419_vm5 = vcmask (!%p238_p2), 64512  }
   0x9   : > { %630 = vmatprep.subr.bf16.mxu0 (!%p238_p2), %v652_v15  ;;  %v322_v23 = vadd.s32 (!%p238_p2), 4294967288, %v317_v21  ;;  %v329_v25 = vadd.s32 (!%p238_p2), 4294967280, %v317_v21  ;;  %v336_v26 = vadd.s32 (!%p238_p2), 4294967272, %v317_v21  ;;  %v320_v28 = vsub.s32 (!%p238_p2), %v317_v21, %v319_v22  ;;  %623 = vmatpush3.msra.mxu1 (!%p238_p2), %v309_v45  ;;  %v310_v53 = vld [vmem:[%s783_s5] sm:$0x1] (!%p238_p2) }
   0xa   : > { %v311_v54 = vld [vmem:[%s784_s6] sm:$0x1] (!%p238_p2)  ;;  %v501_v62 = vsub.s32 (!%p238_p2), 0, %v319_v22 }
   0xb   : > { %v325_v30 = vsub.s32 (!%p238_p2), %v322_v23, %v319_v22  ;;  %v332_v31 = vsub.s32 (!%p238_p2), %v329_v25, %v319_v22  ;;  %v339_v34 = vsub.s32 (!%p238_p2), %v336_v26, %v319_v22 }
   0xc   : > { %632 = vmatpush3.bf16.msra.mxu0 (!%p238_p2), %v631_v18 }
   0xd   : > { %s787_s25 = smov (!%p269_p3, %s589_s25), 1 }
   0xe   : > { %s602_s26 = sshll.u32 %s787_s25, 6 }
   0xf   : > { %s273_s29 = scalar_lea.vmem %s778_s0, %s602_s26  ;;  %s278_s30 = scalar_lea.vmem %s785_s7, %s602_s26 }
  0x10   : > { %v711_v0 = vld [vmem:[%s273_s29] sm:$0xff]  ;;  %v713_v1 = vld [vmem:[%s273_s29 + $0x8] sm:$0xff]  ;;  %v721_v5 = vld [vmem:[%s273_s29 + $0x10] sm:$0xff] }
  0x11   : > { %v715_v2 = vld [vmem:[%s273_s29 + $0x20] sm:$0xff]  ;;  %v287_v3 = vadd.f32 %v713_v1, %v711_v0  ;;  %v719_v4 = vld [vmem:[%s273_s29 + $0x28] sm:$0xff]  ;;  %v723_v6 = vld [vmem:[%s273_s29 + $0x18] sm:$0xff] }
  0x12   : > { %v293_v7 = vadd.f32 %v719_v4, %v715_v2  ;;  %v727_v8 = vld [vmem:[%s273_s29 + $0x30] sm:$0xff]  ;;  %v729_v9 = vld [vmem:[%s273_s29 + $0x38] sm:$0xff]  ;;  %v290_v10 = vadd.f32 %v723_v6, %v721_v5 }
  0x13   : > { %288 = vadd.xlane.f32.xlu0 %v287_v3  ;;  %v296_v11 = vadd.f32 %v729_v9, %v727_v8 }
  0x14   : > { %294 = vadd.xlane.f32.xlu1 %v293_v7 }
  0x17   : > { %291 = vadd.xlane.f32.xlu0 %v290_v10 }
  0x18   : > { %297 = vadd.xlane.f32.xlu1 %v296_v11 }
  0xa0   : > { %v289_v24 = vpop.xlane.xlu0 %288 }
  0xa1   : > { %v295_v27 = vpop.xlane.xlu1 %294  ;;  %v299_v29 = vmul.f32 0.00390625, %v289_v24 }
  0xa2   : > { %v301_v32 = vmul.f32 0.00390625, %v295_v27 }
  0xa3   : > { %v321_v38 = vrot.slane %v299_v29, %v320_v28 }
  0xa4   : > { %v292_v33 = vpop.xlane.xlu0 %291  ;;  %v333_v40 = vrot.slane %v301_v32, %v332_v31 }
  0xa5   : > { %v300_v35 = vmul.f32 0.00390625, %v292_v33  ;;  %v298_v36 = vpop.xlane.xlu1 %297 }
  0xa6   : > { %v302_v37 = vmul.f32 0.00390625, %v298_v36 }
  0xa7   : > { %v326_v39 = vrot.slane %v300_v35, %v325_v30 }
  0xa8   : > { %v340_v41 = vrot.slane %v302_v37, %v339_v34 }
  0xa9   : > { %v328_v42 = vsel %vm327_vm1, %v326_v39, %v321_v38 }
  0xaa   : > { %v335_v43 = vsel %vm334_vm2, %v333_v40, %v328_v42 }
  0xab   : > { %v342_v44 = vsel %vm341_vm3, %v340_v41, %v335_v43 }
  0xac   : > { %620 = vmatmul.mubr.msk.f32.vlgmr.msra.gmra.mrb[0].mxu0 %vm343_vm4, %v342_v44 }
 0x17f   : > { %v412_v48 = vpop.f32.mrb[0].mxu0 }
 0x180   : > { %v416_v49 = vmul.f32 %v412_v48, %v307_v46  ;;  %v621_v50 = vpop.f32.mrb[1].mxu0 }
 0x182   : > { %v417_v51 = vadd.f32 %v416_v49, %v308_v47 }
 0x184   : > { %v418_v52 = vmax.f32 %v417_v51, 0.0 }
 0x186   : > { %625 = vmatmul.mubr.msk.f32.vlgmr.msra.gmra.mrb[0].mxu1 %vm419_vm5, %v418_v52 }
 0x259   : > { %v489_v55 = vpop.f32.mrb[0].mxu1 }
 0x25a   : > { %v493_v56 = vmul.f32 %v489_v55, %v310_v53  ;;  %v626_v57 = vpop.f32.mrb[1].mxu1 }
 0x25c   : > { %v494_v58 = vadd.f32 %v493_v56, %v311_v54 }
 0x25e   : > { %v495_v59 = vadd.f32 3.0, %v494_v58 }
 0x260   : > { %v496_v60 = vmax.f32 %v495_v59, 0.0 }
 0x262   : > { %v497_v61 = vmin.f32 %v496_v60, 6.0 }
 0x264   : > { %v498_v63 = vmul.f32 0.16666667, %v497_v61 }
 0x266   : > { %v502_v3 = vrot.slane %v498_v63, %v501_v62 }
 0x268   : > { %508 = vbcast.lane.b32.xlu1 %v502_v3, 264  ;;  %504 = vbcast.lane.b32.xlu0 %v502_v3, 256 }
 0x26c   : > { %512 = vbcast.lane.b32.xlu1 %v502_v3, 272 }
 0x270   : > { %516 = vbcast.lane.b32.xlu1 %v502_v3, 280 }
 0x2da   : > { %v509_v7 = vpop.permute.xlu1 %508  ;;  %v505_v10 = vpop.permute.xlu0 %504 }
 0x2db   : > { %v520_v11 = vmul.f32 %v509_v7, %v721_v5  ;;  %v521_v12 = vmul.f32 %v509_v7, %v723_v6  ;;  %v518_v13 = vmul.f32 %v505_v10, %v711_v0  ;;  %v519_v14 = vmul.f32 %v505_v10, %v713_v1 }
 0x2dd   : > { %528 = vst [vmem:[%s278_s30 + $0x10] sm:$0xff] %v520_v11  ;;  %529 = vst [vmem:[%s278_s30 + $0x18] sm:$0xff] %v521_v12 }
 0x2de   : > { %526 = vst [vmem:[%s278_s30] sm:$0xff] %v518_v13  ;;  %527 = vst [vmem:[%s278_s30 + $0x8] sm:$0xff] %v519_v14  ;;  %v513_v15 = vpop.permute.xlu1 %512 }
 0x2df   : > { %v522_v16 = vmul.f32 %v513_v15, %v715_v2  ;;  %v523_v17 = vmul.f32 %v513_v15, %v719_v4 }
 0x2e1   : > { %530 = vst [vmem:[%s278_s30 + $0x20] sm:$0xff] %v522_v16  ;;  %531 = vst [vmem:[%s278_s30 + $0x28] sm:$0xff] %v523_v17 }
 0x2e2   : > { %v517_v18 = vpop.permute.xlu1 %516 }
 0x2e3   : > { %v524_v5 = vmul.f32 %v517_v18, %v727_v8  ;;  %v525_v6 = vmul.f32 %v517_v18, %v729_v9 }
 0x2e5   : > { %532 = vst [vmem:[%s278_s30 + $0x30] sm:$0xff] %v524_v5  ;;  %533 = vst [vmem:[%s278_s30 + $0x38] sm:$0xff] %v525_v6 }
 0x2e6 PF: > { %s17_s24 = sadd.s32 1, %s650_s24  }
 0x2e7   : > { %p14_p4 = scmp.ge.s32.totalorder %s17_s24, 4  }
 0x2e9   :  { %16 = sbr.rel (!%p14_p4) target bundleno = 1 (0x1), region = 78 }

</bundles_post_ra>
